<compile_context>
chip_gen: v7x
topology: tpu7x:2x2x1
jax: 0.10.0
libtpu: 0.0.40
codegen_flags: <defaults>
</compile_context>

<pallas_src>
import functools

import jax
import jax.numpy as jnp
from jax.experimental import pallas as pl
from jax.experimental.pallas import tpu as pltpu

# find_ab_params(spread=1.0, min_dist=0.1) -> deterministic scipy curve_fit
# result, hardcoded so we don't depend on scipy.
_A = 1.5769434603113077
_B = 0.8950608779109733
_EPS = 1e-4

_NUM_PARALLEL = 2                        # leading "parallel" grid axis (v7x: 2 TCs)
_GATHER_TEMP_BUDGET = 6 * 1024 * 1024    # bytes of in-kernel temporaries per step
_GATHER_RESIDENT_MAX = 2 * 1024 * 1024   # cap for VMEM-resident [D, bsz] embeddings
_STREAM_INPUT_BUDGET = 6 * 1024 * 1024   # 2 inputs x 2 pipeline bufs x D x TILE x 4B
_MAX_TILE_N = 32768


def _cdiv(a, b):
    return -(-a // b)


def _pick_tile(n_total, cap):
    """Full-extent tile if the problem fits, else the largest multiple of 128 <= cap."""
    cap = max(128, (int(cap) // 128) * 128)
    return int(n_total) if n_total <= cap else cap


def _clamped_tile_map(tiles_per_core, num_tiles):
    """index_map over (core, tile) -> lane-block index, clamping overhang tiles.

    Overhang (core, tile) combos re-read the last real tile; the kernel masks
    them out via the *unclamped* global pair index, so no padding is needed.
    """
    last = num_tiles - 1

    def index_map(c, t):
        return (0, jnp.minimum(c * tiles_per_core + t, last))

    return index_map


def _pair_cross_entropy(d2, gidx, *, a, b, repulsion, eps, bsz, n_total):
    """Per-pair UMAP cross-entropy from squared distances.  d2, gidx: [1, TILE_N]."""
    # dist^(2b) == (dist^2)^b -> one log + one exp, no sqrt.  The 1e-30 guard
    # keeps the log finite at d2 == 0 while still giving prob_dist == 1 there.
    pow_d2 = jnp.exp(b * jnp.log(d2 + 1e-30))
    prob_dist = 1.0 / (1.0 + a * pow_d2)        # exact divide (1e-5 tolerance)

    is_pos = gidx < bsz          # first bsz pairs are positives (graph prob 1)
    is_valid = gidx < n_total    # masks ragged tails / cross-core overhang tiles

    # prob_graph is {0,1}: fuse attraction + repulsion into a single log.
    # clip's upper bound is a no-op (0 <= prob_dist <= 1) -> maximum only.
    log_arg = jnp.where(is_pos,
                        jnp.maximum(prob_dist, eps),
                        jnp.maximum(1.0 - prob_dist, eps))
    coeff = jnp.where(is_pos, 1.0, repulsion)
    # Final select masks invalid lanes (NaN-safe: jnp.where is a select).
    return jnp.where(is_valid, -coeff * jnp.log(log_arg), 0.0)


def _umap_gather_kernel(to_e_ref, from_e_ref, to_idx_ref, from_idx_ref,
                        out_ref, acc_ref, *,
                        a, b, repulsion, eps, bsz, n_total, inv_n,
                        tiles_per_core):
    """Gather-path kernel.

    to_e_ref, from_e_ref : [D, bsz_pad] f32, VMEM-resident (same block every step)
    to_idx_ref, from_idx_ref : [1, TILE_N] int32 per-pair gather indices
    out_ref : [1, 1, 1] f32 per-core partial (already scaled by 1/N)
    acc_ref : [1, TILE_N] f32 running per-lane loss sum (scratch)
    """
    c = pl.program_id(0)                 # parallel (per-core) axis
    t = pl.program_id(1)                 # pair-tile axis within a core
    tile_n = acc_ref.shape[1]
    bsz_pad = to_e_ref.shape[1]

    @pl.when(t == 0)
    def _init():
        acc_ref[...] = jnp.zeros_like(acc_ref)

    g = c * tiles_per_core + t           # unclamped global tile index
    gidx = g * tile_n + jax.lax.broadcasted_iota(jnp.int32, (1, tile_n), 1)

    # Exact one-hot gather of the pair embeddings on the MXU.  Only the tiny
    # int32 indices stream per tile; the embeddings stay resident in VMEM.
    row = jax.lax.broadcasted_iota(jnp.int32, (bsz_pad, tile_n), 0)
    onehot_to = (row == to_idx_ref[...]).astype(jnp.float32)      # [bsz_pad, TILE_N]
    onehot_from = (row == from_idx_ref[...]).astype(jnp.float32)

    gathered_to = jnp.dot(to_e_ref[...], onehot_to,
                          precision=jax.lax.Precision.HIGHEST,
                          preferred_element_type=jnp.float32)     # [D, TILE_N]
    gathered_from = jnp.dot(from_e_ref[...], onehot_from,
                            precision=jax.lax.Precision.HIGHEST,
                            preferred_element_type=jnp.float32)

    diff = gathered_to - gathered_from
    d2 = jnp.sum(diff * diff, axis=0, keepdims=True)              # [1, TILE_N]

    acc_ref[...] += _pair_cross_entropy(
        d2, gidx, a=a, b=b, repulsion=repulsion, eps=eps, bsz=bsz, n_total=n_total)

    @pl.when(t == pl.num_programs(1) - 1)
    def _finalize():
        total = jnp.sum(acc_ref[...], axis=1, keepdims=True)      # one XLU reduce
        out_ref[0] = (total * inv_n).astype(out_ref.dtype)


def _umap_stream_kernel(to_ref, from_ref, out_ref, acc_ref, *,
                        a, b, repulsion, eps, bsz, n_total, inv_n,
                        tiles_per_core):
    """Streaming-path kernel over [D, TILE_N] tiles of pre-gathered pairs."""
    c = pl.program_id(0)
    t = pl.program_id(1)
    tile_n = acc_ref.shape[1]

    @pl.when(t == 0)
    def _init():
        acc_ref[...] = jnp.zeros_like(acc_ref)

    g = c * tiles_per_core + t
    gidx = g * tile_n + jax.lax.broadcasted_iota(jnp.int32, (1, tile_n), 1)

    diff = to_ref[...] - from_ref[...]                            # [D, TILE_N]
    d2 = jnp.sum(diff * diff, axis=0, keepdims=True)              # [1, TILE_N]

    acc_ref[...] += _pair_cross_entropy(
        d2, gidx, a=a, b=b, repulsion=repulsion, eps=eps, bsz=bsz, n_total=n_total)

    @pl.when(t == pl.num_programs(1) - 1)
    def _finalize():
        total = jnp.sum(acc_ref[...], axis=1, keepdims=True)
        out_ref[0] = (total * inv_n).astype(out_ref.dtype)


def umap_loss(embedding_to, embedding_from, key, *,
              negative_sample_rate=5, repulsion_strength=1.0,
              a=_A, b=_B, force_streaming=False, max_tile_n=None):
    """Pallas-backed equivalent of UMAPLoss.forward (mean cross-entropy scalar)."""
    bsz, dim = embedding_to.shape
    r = int(negative_sample_rate)
    n_total = bsz * (1 + r)

    # --- negative sampling bookkeeping: only tiny int32 index arrays ---------
    # repeat_neg[k] == embedding_from[k // r]  =>  neg_from index = perm // r.
    perm = jax.random.permutation(key, bsz * r)
    pos_idx = jnp.arange(bsz, dtype=jnp.int32)
    to_idx = jnp.concatenate([pos_idx, jnp.repeat(pos_idx, r)])             # [N]
    from_idx = jnp.concatenate([pos_idx, (perm // r).astype(jnp.int32)])    # [N]

    to_t = embedding_to.T.astype(jnp.float32)            # [D, bsz]
    from_t = embedding_from.T.astype(jnp.float32)        # [D, bsz]

    kernel_kwargs = dict(a=float(a), b=float(b),
                         repulsion=float(repulsion_strength),
                         eps=float(_EPS), bsz=int(bsz), n_total=int(n_total),
                         inv_n=1.0 / float(n_total))

    # --- choose the in-kernel gather path (preferred) vs streaming fallback --
    bsz_pad = max(8, ((bsz + 7) // 8) * 8)
    resident_bytes = 2 * dim * bsz_pad * 4
    # per-lane VMEM of the one-hots / iota / gathered temporaries (+ slack):
    per_lane_bytes = 16 * bsz_pad + 64 * dim + 512
    gather_tile = ((min(_GATHER_TEMP_BUDGET // per_lane_bytes, 4096)) // 128) * 128
    use_gather = ((not force_streaming)
                  and resident_bytes <= _GATHER_RESIDENT_MAX
                  and gather_tile >= 128)

    if use_gather:
        cap = gather_tile if max_tile_n is None else min(gather_tile, int(max_tile_n))
        tile_n = _pick_tile(n_total, cap)
        num_tiles = _cdiv(n_total, tile_n)
        tiles_per_core = _cdiv(num_tiles, _NUM_PARALLEL)
        grid = (_NUM_PARALLEL, tiles_per_core)
        idx_map = _clamped_tile_map(tiles_per_core, num_tiles)

        pad_b = bsz_pad - bsz
        to_e = jnp.pad(to_t, ((0, 0), (0, pad_b))) if pad_b else to_t
        from_e = jnp.pad(from_t, ((0, 0), (0, pad_b))) if pad_b else from_t

        kernel = functools.partial(_umap_gather_kernel,
                                   tiles_per_core=int(tiles_per_core),
                                   **kernel_kwargs)
        cost = pl.CostEstimate(
            flops=int(4 * n_total * bsz_pad * dim + 3 * n_total * dim + 12 * n_total),
            transcendentals=int(2 * n_total),
            bytes_accessed=int(resident_bytes + 2 * n_total * 4 + 4 * _NUM_PARALLEL))

        out = pl.pallas_call(
            kernel,
            out_shape=jax.ShapeDtypeStruct((_NUM_PARALLEL, 1, 1), jnp.float32),
            grid=grid,
            in_specs=[
                pl.BlockSpec((dim, bsz_pad), lambda c, t: (0, 0)),   # resident
                pl.BlockSpec((dim, bsz_pad), lambda c, t: (0, 0)),   # resident
                pl.BlockSpec((1, tile_n), idx_map),
                pl.BlockSpec((1, tile_n), idx_map),
            ],
            out_specs=pl.BlockSpec((1, 1, 1), lambda c, t: (c, 0, 0)),
            scratch_shapes=[pltpu.VMEM((1, tile_n), jnp.float32)],
            compiler_params=pltpu.CompilerParams(
                dimension_semantics=("parallel", "arbitrary")),
            cost_estimate=cost,
        )(to_e, from_e,
          to_idx.reshape(1, n_total), from_idx.reshape(1, n_total))
    else:
        # Streaming fallback for very large batches: a single gather per side
        # materializes [D, N] once (no repeat/concat/pad copies), then large
        # lane-dense tiles are streamed through the kernel.
        to_all = jnp.take(to_t, to_idx, axis=1)        # [D, N]
        from_all = jnp.take(from_t, from_idx, axis=1)  # [D, N]

        stream_tile = min(max(256, _STREAM_INPUT_BUDGET // (16 * dim)), _MAX_TILE_N)
        cap = stream_tile if max_tile_n is None else min(stream_tile, int(max_tile_n))
        tile_n = _pick_tile(n_total, cap)
        num_tiles = _cdiv(n_total, tile_n)
        tiles_per_core = _cdiv(num_tiles, _NUM_PARALLEL)
        grid = (_NUM_PARALLEL, tiles_per_core)
        idx_map = _clamped_tile_map(tiles_per_core, num_tiles)

        kernel = functools.partial(_umap_stream_kernel,
                                   tiles_per_core=int(tiles_per_core),
                                   **kernel_kwargs)
        cost = pl.CostEstimate(
            flops=int(3 * n_total * dim + 12 * n_total),
            transcendentals=int(2 * n_total),
            bytes_accessed=int(2 * n_total * dim * 4 + 4 * _NUM_PARALLEL))

        out = pl.pallas_call(
            kernel,
            out_shape=jax.ShapeDtypeStruct((_NUM_PARALLEL, 1, 1), jnp.float32),
            grid=grid,
            in_specs=[
                pl.BlockSpec((dim, tile_n), idx_map),
                pl.BlockSpec((dim, tile_n), idx_map),
            ],
            out_specs=pl.BlockSpec((1, 1, 1), lambda c, t: (c, 0, 0)),
            scratch_shapes=[pltpu.VMEM((1, tile_n), jnp.float32)],
            compiler_params=pltpu.CompilerParams(
                dimension_semantics=("parallel", "arbitrary")),
            cost_estimate=cost,
        )(to_all, from_all)

    # Sum the per-core partial means (each is already scaled by 1/N).
    return jnp.sum(out)


def _reference_umap_loss(embedding_to, embedding_from, key, *,
                         negative_sample_rate=5, repulsion_strength=1.0,
                         a=_A, b=_B):
    """Pure-JAX reference mirroring the PyTorch forward (same permutation key)."""
    bsz = embedding_to.shape[0]
    emb_neg_to = jnp.repeat(embedding_to, negative_sample_rate, axis=0)
    repeat_neg = jnp.repeat(embedding_from, negative_sample_rate, axis=0)
    perm = jax.random.permutation(key, repeat_neg.shape[0])
    emb_neg_from = repeat_neg[perm]

    d_pos = jnp.linalg.norm(embedding_to - embedding_from, axis=1)
    d_neg = jnp.linalg.norm(emb_neg_to - emb_neg_from, axis=1)
    dist = jnp.concatenate([d_pos, d_neg], axis=0)
    p_dist = 1.0 / (1.0 + a * dist ** (2.0 * b))
    p_graph = jnp.concatenate(
        [jnp.ones((bsz,)), jnp.zeros((bsz * negative_sample_rate,))], axis=0)

    attraction = -p_graph * jnp.log(jnp.clip(p_dist, _EPS, 1.0))
    repellant = (-(1.0 - p_graph) * jnp.log(jnp.clip(1.0 - p_dist, _EPS, 1.0))
                 * repulsion_strength)
    return jnp.mean(attraction + repellant)


if __name__ == "__main__":
    key = jax.random.PRNGKey(0)
    k_to, k_from, k_perm = jax.random.split(key, 3)

    batch_size = 8           # "mini-batch" of positive edges
    embed_dim = 32
    negative_sample_rate = 5

    embedding_to = jax.random.normal(k_to, (batch_size, embed_dim), jnp.float32)
    embedding_from = jax.random.normal(k_from, (batch_size, embed_dim), jnp.float32)

    loss = umap_loss(embedding_to, embedding_from, k_perm,
                     negative_sample_rate=negative_sample_rate,
                     repulsion_strength=1.0)
    jax.block_until_ready(loss)
    ref = _reference_umap_loss(embedding_to, embedding_from, k_perm,
                               negative_sample_rate=negative_sample_rate,
                               repulsion_strength=1.0)
    assert jnp.allclose(loss, ref, atol=1e-5, rtol=1e-5), (loss, ref)

    # Multi-tile gather path: ragged last tile + cross-core overhang tiles.
    k2_to, k2_from, k2_perm = jax.random.split(jax.random.PRNGKey(1), 3)
    big_bsz = 700            # N = 4200 pairs
    big_to = jax.random.normal(k2_to, (big_bsz, embed_dim), jnp.float32)
    big_from = jax.random.normal(k2_from, (big_bsz, embed_dim), jnp.float32)
    big_loss = umap_loss(big_to, big_from, k2_perm,
                         negative_sample_rate=negative_sample_rate,
                         repulsion_strength=1.0)
    jax.block_until_ready(big_loss)
    big_ref = _reference_umap_loss(big_to, big_from, k2_perm,
                                   negative_sample_rate=negative_sample_rate,
                                   repulsion_strength=1.0)
    assert jnp.allclose(big_loss, big_ref, atol=1e-5, rtol=1e-5), (big_loss, big_ref)

    # Streaming fallback (very-large-batch regime), forced at small shapes with
    # a small tile so the multi-tile ragged / overhang handling is exercised.
    stream_loss = umap_loss(big_to, big_from, k2_perm,
                            negative_sample_rate=negative_sample_rate,
                            repulsion_strength=1.0,
                            force_streaming=True, max_tile_n=512)
    jax.block_until_ready(stream_loss)
    assert jnp.allclose(stream_loss, big_ref, atol=1e-5, rtol=1e-5), (stream_loss, big_ref)

    print("KERNEL_OK")
</pallas_src>

<mosaic_0001>
module attributes {stable_mosaic.version = 11 : i64} {
  func.func @_umap_gather_kernel(%arg0: i32, %arg1: i32, %arg2: memref<32x8xf32, #tpu.memory_space<vmem>>, %arg3: memref<32x8xf32, #tpu.memory_space<vmem>>, %arg4: memref<1x48xi32, #tpu.memory_space<vmem>>, %arg5: memref<1x48xi32, #tpu.memory_space<vmem>>, %arg6: memref<1x1x1xf32, #tpu.memory_space<vmem>>, %arg7: memref<1x48xf32, #tpu.memory_space<vmem>>) attributes {dimension_semantics = [#tpu.dimension_semantics<parallel>, #tpu.dimension_semantics<arbitrary>], iteration_bounds = array<i64: 2, 1>, scalar_prefetch = 0 : i64, scratch_operands = 1 : i64, tpu.core_type = #tpu.core_type<tc>, window_params = [{pipeline_mode = #tpu.pipeline_mode<synchronous>, transform_indices = @transform_0, window_bounds = array<i64: 32, 8>}, {pipeline_mode = #tpu.pipeline_mode<synchronous>, transform_indices = @transform_1, window_bounds = array<i64: 32, 8>}, {transform_indices = @transform_2, window_bounds = array<i64: 1, 48>}, {transform_indices = @transform_3, window_bounds = array<i64: 1, 48>}, {transform_indices = @transform_4, window_bounds = array<i64: 1, 1, 1>}]} {
    %c0_i32 = arith.constant 0 : i32
    %0 = arith.cmpi eq, %arg1, %c0_i32 : i32
    %1 = arith.extui %0 : i1 to i32
    %c0_i32_0 = arith.constant 0 : i32
    %2 = arith.cmpi ne, %1, %c0_i32_0 : i32
    scf.if %2 {
      %cst_29 = arith.constant 0.000000e+00 : f32
      %66 = vector.broadcast %cst_29 : f32 to vector<1x48xf32>
      %c0_30 = arith.constant 0 : index
      %c0_31 = arith.constant 0 : index
      %67 = vector.load %arg7[%c0_30, %c0_31] : memref<1x48xf32, #tpu.memory_space<vmem>>, vector<1x48xf32>
      tpu.vector_store %arg7[%c0_30, %c0_31], %66 {strides = array<i32>} : memref<1x48xf32, #tpu.memory_space<vmem>>, vector<1x48xf32>,
    } else {
    }
    %c1_i32 = arith.constant 1 : i32
    %3 = arith.muli %arg0, %c1_i32 : i32
    %4 = arith.addi %3, %arg1 : i32
    %c48_i32 = arith.constant 48 : i32
    %5 = arith.muli %4, %c48_i32 : i32
    %6 = tpu.iota {dimensions = array<i32: 1>} : vector<1x48xi32>
    %7 = vector.broadcast %5 : i32 to vector<1x48xi32>
    %8 = arith.addi %7, %6 : vector<1x48xi32>
    %9 = tpu.iota {dimensions = array<i32: 0>} : vector<8x48xi32>
    %c0 = arith.constant 0 : index
    %c0_1 = arith.constant 0 : index
    %10 = vector.load %arg4[%c0, %c0_1] : memref<1x48xi32, #tpu.memory_space<vmem>>, vector<1x48xi32>
    %11 = vector.broadcast %10 : vector<1x48xi32> to vector<8x48xi32>
    %12 = arith.cmpi eq, %9, %11 : vector<8x48xi32>
    %13 = arith.extui %12 : vector<8x48xi1> to vector<8x48xi32>
    %14 = arith.sitofp %13 : vector<8x48xi32> to vector<8x48xf32>
    %c0_2 = arith.constant 0 : index
    %c0_3 = arith.constant 0 : index
    %15 = vector.load %arg5[%c0_2, %c0_3] : memref<1x48xi32, #tpu.memory_space<vmem>>, vector<1x48xi32>
    %16 = vector.broadcast %15 : vector<1x48xi32> to vector<8x48xi32>
    %17 = arith.cmpi eq, %9, %16 : vector<8x48xi32>
    %18 = arith.extui %17 : vector<8x48xi1> to vector<8x48xi32>
    %19 = arith.sitofp %18 : vector<8x48xi32> to vector<8x48xf32>
    %c0_4 = arith.constant 0 : index
    %c0_5 = arith.constant 0 : index
    %20 = vector.load %arg2[%c0_4, %c0_5] : memref<32x8xf32, #tpu.memory_space<vmem>>, vector<32x8xf32>
    %cst = arith.constant dense<0.000000e+00> : vector<32x48xf32>
    %21 = tpu.matmul %20, %14, %cst {dimension_numbers = #tpu.dot_dimension_numbers<[1], [0], [0], [1], [0, 0, 1, 1], [], []>, precision = #tpu.contract_precision<fp32>} : vector<32x8xf32>, vector<8x48xf32>, vector<32x48xf32> -> vector<32x48xf32>
    %c0_6 = arith.constant 0 : index
    %c0_7 = arith.constant 0 : index
    %22 = vector.load %arg3[%c0_6, %c0_7] : memref<32x8xf32, #tpu.memory_space<vmem>>, vector<32x8xf32>
    %cst_8 = arith.constant dense<0.000000e+00> : vector<32x48xf32>
    %23 = tpu.matmul %22, %19, %cst_8 {dimension_numbers = #tpu.dot_dimension_numbers<[1], [0], [0], [1], [0, 0, 1, 1], [], []>, precision = #tpu.contract_precision<fp32>} : vector<32x8xf32>, vector<8x48xf32>, vector<32x48xf32> -> vector<32x48xf32>
    %24 = arith.subf %21, %23 : vector<32x48xf32>
    %25 = arith.mulf %24, %24 : vector<32x48xf32>
    %cst_9 = arith.constant dense<0.000000e+00> : vector<48xf32>
    %26 = vector.multi_reduction <add>, %25, %cst_9 [0] : vector<32x48xf32> to vector<48xf32>
    %27 = vector.shape_cast %26 : vector<48xf32> to vector<1x48xf32>
    %c0_10 = arith.constant 0 : index
    %c0_11 = arith.constant 0 : index
    %28 = vector.load %arg7[%c0_10, %c0_11] : memref<1x48xf32, #tpu.memory_space<vmem>>, vector<1x48xf32>
    %cst_12 = arith.constant 1.000000e-30 : f32
    %29 = vector.broadcast %cst_12 : f32 to vector<1x48xf32>
    %30 = arith.addf %27, %29 : vector<1x48xf32>
    %31 = math.log %30 : vector<1x48xf32>
    %cst_13 = arith.constant 0.895060896 : f32
    %32 = vector.broadcast %cst_13 : f32 to vector<1x48xf32>
    %33 = arith.mulf %32, %31 : vector<1x48xf32>
    %34 = math.exp %33 : vector<1x48xf32>
    %cst_14 = arith.constant 1.57694352 : f32
    %35 = vector.broadcast %cst_14 : f32 to vector<1x48xf32>
    %36 = arith.mulf %35, %34 : vector<1x48xf32>
    %cst_15 = arith.constant 1.000000e+00 : f32
    %37 = vector.broadcast %cst_15 : f32 to vector<1x48xf32>
    %38 = arith.addf %37, %36 : vector<1x48xf32>
    %cst_16 = arith.constant 1.000000e+00 : f32
    %39 = vector.broadcast %cst_16 : f32 to vector<1x48xf32>
    %40 = arith.divf %39, %38 : vector<1x48xf32>
    %c8_i32 = arith.constant 8 : i32
    %41 = vector.broadcast %c8_i32 : i32 to vector<1x48xi32>
    %42 = arith.cmpi slt, %8, %41 : vector<1x48xi32>
    %c48_i32_17 = arith.constant 48 : i32
    %43 = vector.broadcast %c48_i32_17 : i32 to vector<1x48xi32>
    %44 = arith.cmpi slt, %8, %43 : vector<1x48xi32>
    %cst_18 = arith.constant 9.99999974E-5 : f32
    %45 = vector.broadcast %cst_18 : f32 to vector<1x48xf32>
    %46 = arith.maximumf %40, %45 : vector<1x48xf32>
    %cst_19 = arith.constant 1.000000e+00 : f32
    %47 = vector.broadcast %cst_19 : f32 to vector<1x48xf32>
    %48 = arith.subf %47, %40 : vector<1x48xf32>
    %cst_20 = arith.constant 9.99999974E-5 : f32
    %49 = vector.broadcast %cst_20 : f32 to vector<1x48xf32>
    %50 = arith.maximumf %48, %49 : vector<1x48xf32>
    %51 = arith.select %42, %46, %50 : vector<1x48xi1>, vector<1x48xf32>
    %cst_21 = arith.constant 1.000000e+00 : f32
    %cst_22 = arith.constant 1.000000e+00 : f32
    %52 = vector.broadcast %cst_21 : f32 to vector<1x48xf32>
    %53 = vector.broadcast %cst_22 : f32 to vector<1x48xf32>
    %54 = arith.select %42, %52, %53 : vector<1x48xi1>, vector<1x48xf32>
    %cst_23 = arith.constant 0.000000e+00 : f32
    %55 = vector.broadcast %cst_23 : f32 to vector<1x48xf32>
    %56 = arith.subf %55, %54 : vector<1x48xf32>
    %57 = math.log %51 : vector<1x48xf32>
    %58 = arith.mulf %56, %57 : vector<1x48xf32>
    %cst_24 = arith.constant 0.000000e+00 : f32
    %59 = vector.broadcast %cst_24 : f32 to vector<1x48xf32>
    %60 = arith.select %44, %58, %59 : vector<1x48xi1>, vector<1x48xf32>
    %61 = arith.addf %28, %60 : vector<1x48xf32>
    %c0_25 = arith.constant 0 : index
    %c0_26 = arith.constant 0 : index
    %62 = vector.load %arg7[%c0_25, %c0_26] : memref<1x48xf32, #tpu.memory_space<vmem>>, vector<1x48xf32>
    tpu.vector_store %arg7[%c0_25, %c0_26], %61 {strides = array<i32>} : memref<1x48xf32, #tpu.memory_space<vmem>>, vector<1x48xf32>,
    %c0_i32_27 = arith.constant 0 : i32
    %63 = arith.cmpi eq, %arg1, %c0_i32_27 : i32
    %64 = arith.extui %63 : i1 to i32
    %c0_i32_28 = arith.constant 0 : i32
    %65 = arith.cmpi ne, %64, %c0_i32_28 : i32
    scf.if %65 {
      %c0_29 = arith.constant 0 : index
      %c0_30 = arith.constant 0 : index
      %66 = vector.load %arg7[%c0_29, %c0_30] : memref<1x48xf32, #tpu.memory_space<vmem>>, vector<1x48xf32>
      %cst_31 = arith.constant dense<0.000000e+00> : vector<1xf32>
      %67 = vector.multi_reduction <add>, %66, %cst_31 [1] : vector<1x48xf32> to vector<1xf32>
      %68 = vector.shape_cast %67 : vector<1xf32> to vector<1x1xf32>
      %cst_32 = arith.constant 0.020833334 : f32
      %69 = vector.broadcast %cst_32 : f32 to vector<1x1xf32>
      %70 = arith.mulf %68, %69 : vector<1x1xf32>
      %c0_33 = arith.constant 0 : index
      %c0_34 = arith.constant 0 : index
      %c0_35 = arith.constant 0 : index
      %71 = vector.load %arg6[%c0_33, %c0_34, %c0_35] : memref<1x1x1xf32, #tpu.memory_space<vmem>>, vector<1x1x1xf32>
      %72 = vector.shape_cast %71 : vector<1x1x1xf32> to vector<1x1xf32>
      %73 = vector.shape_cast %70 : vector<1x1xf32> to vector<1x1x1xf32>
      tpu.vector_store %arg6[%c0_33, %c0_34, %c0_35], %73 {strides = array<i32>} : memref<1x1x1xf32, #tpu.memory_space<vmem>>, vector<1x1x1xf32>,
    } else {
    }
    return
  }
  func.func @transform_0(%arg0: i32, %arg1: i32) -> (i32, i32) {
    %c0_i32 = arith.constant 0 : i32
    %c0_i32_0 = arith.constant 0 : i32
    %c0_i32_1 = arith.constant 0 : i32
    return %c0_i32, %c0_i32_0 : i32, i32
  }
  func.func @transform_1(%arg0: i32, %arg1: i32) -> (i32, i32) {
    %c0_i32 = arith.constant 0 : i32
    %c0_i32_0 = arith.constant 0 : i32
    %c0_i32_1 = arith.constant 0 : i32
    return %c0_i32, %c0_i32_0 : i32, i32
  }
  func.func @transform_2(%arg0: i32, %arg1: i32) -> (i32, i32) {
    %c1_i32 = arith.constant 1 : i32
    %0 = arith.muli %arg0, %c1_i32 : i32
    %1 = arith.addi %0, %arg1 : i32
    %c0_i32 = arith.constant 0 : i32
    %2 = arith.minsi %1, %c0_i32 : i32
    %c0_i32_0 = arith.constant 0 : i32
    %c0_i32_1 = arith.constant 0 : i32
    return %c0_i32_0, %2 : i32, i32
  }
  func.func @transform_3(%arg0: i32, %arg1: i32) -> (i32, i32) {
    %c1_i32 = arith.constant 1 : i32
    %0 = arith.muli %arg0, %c1_i32 : i32
    %1 = arith.addi %0, %arg1 : i32
    %c0_i32 = arith.constant 0 : i32
    %2 = arith.minsi %1, %c0_i32 : i32
    %c0_i32_0 = arith.constant 0 : i32
    %c0_i32_1 = arith.constant 0 : i32
    return %c0_i32_0, %2 : i32, i32
  }
  func.func @transform_4(%arg0: i32, %arg1: i32) -> (i32, i32, i32) {
    %c0_i32 = arith.constant 0 : i32
    %c0_i32_0 = arith.constant 0 : i32
    %c0_i32_1 = arith.constant 0 : i32
    return %arg0, %c0_i32, %c0_i32_0 : i32, i32, i32
  }
}

</mosaic_0001>

<bundles_post_ra>
// kernel: tpu_custom_call.1
= control target key start
LH: loop header
LB: loop body
LE: loop exit
PB: predicated region body
PF: predicated region fallthrough
CT: control target
= control target key end

     0   :  { %s1890_s15 = smov 0   ;;  %s1892_s16 = smov 0   ;;  %s2149_s0 = inlined_call_operand.vmem [shape: f32[32,8], index: 0, kind: input, shape index: {}]   ;;  %s2150_s1 = inlined_call_operand.vmem [shape: f32[32,8], index: 1, kind: input, shape index: {}]   ;;  %s2151_s2 = inlined_call_operand.vmem [shape: s32[1,48], index: 2, kind: input, shape index: {}]   ;;  %s2152_s3 = inlined_call_operand.vmem [shape: s32[1,48], index: 3, kind: input, shape index: {}]   ;;  %s2153_s4 = inlined_call_operand.vmem [shape: f32[2,1,1], index: 4, kind: output, shape index: {}]  }
   0x1   :  { %s1894_s17 = smov 0  }
   0x2 LB: > { %s26_s18 = sadd.s32 1, %s1857_s16  ;;  %p1590_p0 = scmp.ge.s32.totalorder %s1861_s17, 1  ;;  %s1861_s17 = sphi %s1894_s17, %s14_s17   ;;  %s1857_s16 = sphi %s1892_s16, %s2159_s16   ;;  %s1853_s15 = sphi %s1890_s15, %s2158_s15  }
   0x3   : > { %p28_p1 = scmp.ge.s32.totalorder %s26_s18, 2  ;;  %p204_p2 = scmp.lt.s32.totalorder %s1861_s17, 3 }
   0x5   : > { %s2161_s18 = smov (%p28_p1, %s26_s18), 0  ;;  %p205_p3 = pnand %p1590_p0, %p204_p2 }
   0x6   : > { %p236_p4 = scmp.lt.s32.totalorder (!%p205_p3), %s1853_s15, 0  ;;  %v264_v0 = vlaneseq (!%p205_p3)  ;;  %v286_v1 = vld [vmem:[%s2149_s0] sm:$0xff] (!%p205_p3)  ;;  %vm290_vm0 = vcmask (!%p205_p3), 64512   ;;  %v287_v3 = vld [vmem:[%s2149_s0 + $0x8] sm:$0xff] (!%p205_p3)  ;;  %v288_v8 = vld [vmem:[%s2149_s0 + $0x10] sm:$0xff] (!%p205_p3)  ;;  %v1863_v42 = vmov (!%p205_p3), 1.0  }
   0x7   : > { %208 = sbr.rel (%p205_p3) target bundleno = 524 (0x20c), region = 36  ;;  %v878_v2 = vld [vmem:[%s2150_s1] sm:$0xff] (!%p205_p3)  ;;  %v292_v4 = vsel (!%p205_p3), %vm290_vm0, %v286_v1, 0  ;;  %v295_v6 = vsel (!%p205_p3), %vm290_vm0, %v287_v3, 0  ;;  %v879_v7 = vld [vmem:[%s2150_s1 + $0x8] sm:$0xff] (!%p205_p3)  ;;  %v880_v9 = vld [vmem:[%s2150_s1 + $0x10] sm:$0xff] (!%p205_p3) }
   0x8   : > { %v883_v5 = vsel (!%p205_p3), %vm290_vm0, %v878_v2, 0  ;;  %v269_v10 = vshrl.u32 (!%p205_p3), %v264_v0, 7  ;;  %v1936_v11 = vand.u32 (!%p205_p3), 4294901760, %v292_v4  ;;  %v1940_v13 = vand.u32 (!%p205_p3), 4294901760, %v295_v6  ;;  %v289_v14 = vld [vmem:[%s2149_s0 + $0x18] sm:$0xff] (!%p205_p3)  ;;  %s263_s20 = smul.u32 (!%p205_p3), 48, %s1853_s15 }
   0x9   : > { %v1938_v12 = vand.u32 (!%p205_p3), 4294901760, %v883_v5  ;;  %v886_v15 = vsel (!%p205_p3), %vm290_vm0, %v879_v7, 0  ;;  %v298_v16 = vsel (!%p205_p3), %vm290_vm0, %v288_v8, 0  ;;  %v889_v17 = vsel (!%p205_p3), %vm290_vm0, %v880_v9, 0  ;;  %v881_v19 = vld [vmem:[%s2150_s1 + $0x18] sm:$0xff] (!%p205_p3)  ;;  %p253_p5 = scmp.lt.s32.totalorder (!%p205_p3), %s1853_s15, 1 }
   0xa   : > { %v301_v18 = vsel (!%p205_p3), %vm290_vm0, %v289_v14, 0  ;;  %v1955_v20 = vsub.f32 (!%p205_p3), %v292_v4, %v1936_v11  ;;  %v1961_v22 = vsub.f32 (!%p205_p3), %v295_v6, %v1940_v13  ;;  %v1963_v23 = vand.u32 (!%p205_p3), 4294901760, %v886_v15 }
   0xb   : > { %v1958_v21 = vsub.f32 (!%p205_p3), %v883_v5, %v1938_v12  ;;  %v1965_v24 = vand.u32 (!%p205_p3), 4294901760, %v298_v16  ;;  %v1967_v25 = vand.u32 (!%p205_p3), 4294901760, %v889_v17  ;;  %v1969_v26 = vand.u32 (!%p205_p3), 4294901760, %v301_v18 }
   0xc   : > { %v892_v27 = vsel (!%p205_p3), %vm290_vm0, %v881_v19, 0  ;;  %v371_v28 = vand.u32 (!%p205_p3), 4294901760, %v1955_v20  ;;  %v381_v30 = vand.u32 (!%p205_p3), 4294901760, %v1961_v22  ;;  %v1982_v31 = vsub.f32 (!%p205_p3), %v886_v15, %v1963_v23 }
   0xd   : > { %v962_v29 = vand.u32 (!%p205_p3), 4294901760, %v1958_v21  ;;  %v1985_v34 = vsub.f32 (!%p205_p3), %v298_v16, %v1965_v24  ;;  %v1988_v35 = vsub.f32 (!%p205_p3), %v889_v17, %v1967_v25  ;;  %v1991_v36 = vsub.f32 (!%p205_p3), %v301_v18, %v1969_v26 }
   0xe   : > { %s237_s5 = scalar_select %p236_p4, %s1853_s15, 0  ;;  %v1993_v37 = vand.u32 4294901760, %v892_v27  ;;  %v372_v40 = vsub.f32 %v1955_v20, %v371_v28  ;;  %v382_v43 = vsub.f32 %v1961_v22, %v381_v30  ;;  %v972_v44 = vand.u32 4294901760, %v1982_v31 }
   0xf   : > { %v963_v41 = vsub.f32 %v1958_v21, %v962_v29  ;;  %v391_v45 = vand.u32 4294901760, %v1985_v34  ;;  %v982_v46 = vand.u32 4294901760, %v1988_v35  ;;  %v401_v49 = vand.u32 4294901760, %v1991_v36  ;;  %s2165_s15 = smov (!%p253_p5, %s1853_s15), 1 }
  0x10   : > { %s2163_s5 = smov (!%p236_p4, %s237_s5), 0  ;;  %v373_v47 = vand.u32 4294901760, %v372_v40  ;;  %v2029_v50 = vsub.f32 %v892_v27, %v1993_v37  ;;  %v383_v51 = vand.u32 4294901760, %v382_v43  ;;  %v973_v52 = vsub.f32 %v1982_v31, %v972_v44  ;;  %s255_s23 = scalar_lea.vmem %s2153_s4, %s2165_s15 }
  0x11   : > { %s240_s12 = scalar_lea.vmem %s2151_s2, %s2163_s5  ;;  %s249_s19 = scalar_lea.vmem %s2152_s3, %s2163_s5  ;;  %v964_v48 = vand.u32 4294901760, %v963_v41  ;;  %v392_v53 = vsub.f32 %v1985_v34, %v391_v45  ;;  %v983_v54 = vsub.f32 %v1988_v35, %v982_v46  ;;  %v402_v55 = vsub.f32 %v1991_v36, %v401_v49 }
  0x12   : > { %v1597_v32 = vld [vmem:[%s240_s12] ss:$0 sm:$0xff]  ;;  %1671 = vmatprep.mubr.f32.mxu0 %v373_v47  ;;  %v992_v56 = vand.u32 4294901760, %v2029_v50  ;;  %v974_v57 = vand.u32 4294901760, %v973_v52  ;;  %v1864_v60 = vmov 0.0   ;;  %vm260_vm3 = vcmask 385024  }
  0x13   : > { %v1599_v33 = vld [vmem:[%s249_s19] ss:$0 sm:$0xff]  ;;  %vm1995_vm1 = vcmp.eq.s32.totalorder %v269_v10, %v1597_v32  ;;  %1719 = vmatprep.mubr.f32.mxu1 %v964_v48  ;;  %v393_v58 = vand.u32 4294901760, %v392_v53  ;;  %v984_v59 = vand.u32 4294901760, %v983_v54  ;;  %v403_v62 = vand.u32 4294901760, %v402_v55 }
  0x14   : > { %vm1999_vm2 = vcmp.eq.s32.totalorder %v269_v10, %v1599_v33  ;;  %1669 = vmatprep.subr.msk.mxu0 %vm1995_vm1, %v1863_v42  ;;  %v1598_v61 = vsel %vm1995_vm1, 1.0, %v1864_v60  ;;  %v993_v63 = vsub.f32 %v2029_v50, %v992_v56  ;;  %261 = vst.msk [vmem:[#allocation2] sm:$0x1] %vm260_vm3, %v1864_v60  ;;  %vm1477_vm4 = vcmask 392192  }
  0x15   : > { %1717 = vmatprep.subr.msk.mxu1 %vm1999_vm2, %v1863_v42  ;;  %1670 = vmatpush3.msk.msra.mxu0 %vm1995_vm1, %v1863_v42  ;;  %v411_v1 = vsub.f32 %v1598_v61, %v1598_v61  ;;  %v1600_v2 = vsel %vm1999_vm2, 1.0, %v1864_v60  ;;  %v265_v48 = vand.u32 127, %v264_v0  ;;  %vm1523_vm7 = vcmask 0  }
  0x16   : > { %1718 = vmatpush3.msk.msra.mxu1 %vm1999_vm2, %v1863_v42  ;;  %1672 = vmatmul.mubr.f32.vlgmr.msra.gmra.mrb[0].mxu0 %v383_v51  ;;  %v1002_v3 = vsub.f32 %v1600_v2, %v1600_v2  ;;  %v994_v4 = vand.u32 4294901760, %v993_v63 }
  0x17   : > { %1720 = vmatmul.mubr.f32.vlgmr.msra.gmra.mrb[0].mxu1 %v974_v57  ;;  %1674 = vmatprep.mubr.f32.mxu0 %v393_v58  ;;  %v412_v5 = vand.u32 4294901760, %v411_v1 }
  0x18   : > { %1722 = vmatprep.mubr.f32.mxu1 %v984_v59  ;;  %v1003_v6 = vand.u32 4294901760, %v1002_v3 }
  0x19   : > { %v413_v7 = vsub.f32 %v411_v1, %v412_v5 }
  0x1a   : > { %1675 = vmatmul.mubr.f32.gmra.mrb[2].mxu0 %v403_v62  ;;  %v1004_v8 = vsub.f32 %v1002_v3, %v1003_v6 }
  0x1b   : > { %1679 = vmatprep.mubr.f32.mxu0 %v1936_v11  ;;  %1723 = vmatmul.mubr.f32.gmra.mrb[2].mxu1 %v994_v4  ;;  %v414_v9 = vand.u32 4294901760, %v413_v7  ;;  %v1491_v58 = vld [vmem:[#allocation2] sm:$0x1] }
  0x1c   : > { %1727 = vmatprep.mubr.f32.mxu1 %v1938_v12  ;;  %v1005_v10 = vand.u32 4294901760, %v1004_v8 }
  0x1d   : > { %1677 = vmatprep.subr.mxu0 %v414_v9 }
  0x1e   : > { %1725 = vmatprep.subr.mxu1 %v1005_v10  ;;  %1678 = vmatpush3.msra.mxu0 %v414_v9 }
  0x1f   : > { %1726 = vmatpush3.msra.mxu1 %v1005_v10  ;;  %1680 = vmatmul.mubr.f32.vlgmr.msra.gmra.mrb[0].mxu0 %v1940_v13 }
  0x20   : > { %1728 = vmatmul.mubr.f32.vlgmr.msra.gmra.mrb[0].mxu1 %v1963_v23  ;;  %1682 = vmatprep.mubr.f32.mxu0 %v1965_v24 }
  0x21   : > { %1730 = vmatprep.mubr.f32.mxu1 %v1967_v25  ;;  %1685 = vmatprep.subr.mxu0 %v411_v1 }
  0x22   : > { %1733 = vmatprep.subr.mxu1 %v1002_v3  ;;  %1686 = vmatpush3.msra.mxu0 %v411_v1 }
  0x23   : > { %1683 = vmatmul.mubr.f32.gmra.mrb[2].mxu0 %v1969_v26  ;;  %1734 = vmatpush3.msra.mxu1 %v1002_v3 }
  0x24   : > { %1731 = vmatmul.mubr.f32.gmra.mrb[2].mxu1 %v1993_v37  ;;  %1687 = vmatprep.mubr.f32.mxu0 %v1955_v20 }
  0x25   : > { %1735 = vmatprep.mubr.f32.mxu1 %v1958_v21  ;;  %1693 = vmatprep.subr.msk.mxu0 %vm1995_vm1, %v1863_v42 }
  0x26   : > { %1741 = vmatprep.subr.msk.mxu1 %vm1999_vm2, %v1863_v42 }
  0x27   : > { %1688 = vmatmul.mubr.f32.vlgmr.msra.gmra.mrb[0].mxu0 %v1961_v22 }
  0x28   : > { %1736 = vmatmul.mubr.f32.vlgmr.msra.gmra.mrb[0].mxu1 %v1982_v31  ;;  %1690 = vmatprep.mubr.f32.mxu0 %v1985_v34 }
  0x29   : > { %1738 = vmatprep.mubr.f32.mxu1 %v1988_v35  ;;  %1694 = vmatpush3.msk.msra.mxu0 %vm1995_vm1, %v1863_v42 }
  0x2a   : > { %1742 = vmatpush3.msk.msra.mxu1 %vm1999_vm2, %v1863_v42  ;;  %1701 = vmatprep.subr.mxu0 %v412_v5 }
  0x2b   : > { %1691 = vmatmul.mubr.f32.gmra.mrb[2].mxu0 %v1991_v36  ;;  %1749 = vmatprep.subr.mxu1 %v1003_v6 }
  0x2c   : > { %1739 = vmatmul.mubr.f32.gmra.mrb[2].mxu1 %v2029_v50  ;;  %1695 = vmatprep.mubr.f32.mxu0 %v371_v28 }
  0x2d   : > { %1743 = vmatprep.mubr.f32.mxu1 %v962_v29 }
  0x2f   : > { %1696 = vmatmul.mubr.f32.vlgmr.msra.gmra.mrb[0].mxu0 %v381_v30 }
  0x30   : > { %1744 = vmatmul.mubr.f32.vlgmr.msra.gmra.mrb[0].mxu1 %v972_v44  ;;  %1698 = vmatprep.mubr.f32.mxu0 %v391_v45 }
  0x31   : > { %1746 = vmatprep.mubr.f32.mxu1 %v982_v46  ;;  %1702 = vmatpush3.msra.mxu0 %v412_v5 }
  0x32   : > { %1750 = vmatpush3.msra.mxu1 %v1003_v6  ;;  %1709 = vmatprep.subr.msk.mxu0 %vm1995_vm1, %v1863_v42 }
  0x33   : > { %1699 = vmatmul.mubr.f32.gmra.mrb[2].mxu0 %v401_v49  ;;  %1757 = vmatprep.subr.msk.mxu1 %vm1999_vm2, %v1863_v42  ;;  %v266_v49 = vstv %s263_s20 }
  0x34   : > { %1747 = vmatmul.mubr.f32.gmra.mrb[2].mxu1 %v992_v56  ;;  %1703 = vmatprep.mubr.f32.mxu0 %v1936_v11  ;;  %v267_v50 = vadd.s32 %v266_v49, %v265_v48 }
  0x35   : > { %1751 = vmatprep.mubr.f32.mxu1 %v1938_v12 }
  0x36   : > { %vm1502_vm5 = vcmp.lt.s32.totalorder %v267_v50, 8  ;;  %vm1503_vm6 = vcmp.lt.s32.totalorder %v267_v50, 48 }
  0x37   : > { %1704 = vmatmul.mubr.f32.vlgmr.msra.gmra.mrb[0].mxu0 %v1940_v13 }
  0x38   : > { %1752 = vmatmul.mubr.f32.vlgmr.msra.gmra.mrb[0].mxu1 %v1963_v23  ;;  %1706 = vmatprep.mubr.f32.mxu0 %v1965_v24 }
  0x39   : > { %1754 = vmatprep.mubr.f32.mxu1 %v1967_v25  ;;  %1710 = vmatpush3.msk.msra.mxu0 %vm1995_vm1, %v1863_v42 }
  0x3a   : > { %1758 = vmatpush3.msk.msra.mxu1 %vm1999_vm2, %v1863_v42 }
  0x3b   : > { %1707 = vmatmul.mubr.f32.gmra.mrb[2].mxu0 %v1969_v26 }
  0x3c   : > { %1755 = vmatmul.mubr.f32.gmra.mrb[2].mxu1 %v1993_v37  ;;  %1711 = vmatprep.mubr.f32.mxu0 %v1936_v11 }
  0x3d   : > { %1759 = vmatprep.mubr.f32.mxu1 %v1938_v12 }
  0x3f   : > { %1712 = vmatmul.mubr.f32.vlgmr.msra.gmra.mrb[0].mxu0 %v1940_v13 }
  0x40   : > { %1760 = vmatmul.mubr.f32.vlgmr.msra.gmra.mrb[0].mxu1 %v1963_v23  ;;  %1714 = vmatprep.mubr.f32.mxu0 %v1965_v24 }
  0x41   : > { %1762 = vmatprep.mubr.f32.mxu1 %v1967_v25 }
  0x43   : > { %1715 = vmatmul.mubr.f32.gmra.mrb[2].mxu0 %v1969_v26 }
  0x44   : > { %1763 = vmatmul.mubr.f32.gmra.mrb[2].mxu1 %v1993_v37 }
 0x112   : > { %v1713_v14 = vpop.f32.mrb[0].mxu0 }
 0x113   : > { %v1761_v11 = vpop.f32.mrb[0].mxu1  ;;  %v856_v15 = vpop.f32.mrb[1].mxu0 }
 0x114   : > { %v1470_v12 = vsub.f32 %v1713_v14, %v1761_v11  ;;  %v1447_v16 = vpop.f32.mrb[1].mxu1 }
 0x115   : > { %v1469_v13 = vsub.f32 %v856_v15, %v1447_v16 }
 0x116   : > { %v1474_v17 = vmul.f32 %v1470_v12, %v1470_v12  ;;  %v1716_v18 = vpop.f32.mrb[2].mxu0 }
 0x117   : > { %v1473_v19 = vmul.f32 %v1469_v13, %v1469_v13  ;;  %v1764_v20 = vpop.f32.mrb[2].mxu1  ;;  %v868_v21 = vpop.f32.mrb[3].mxu0 }
 0x118   : > { %v1479_v22 = vsel %vm1477_vm4, %v1474_v17, 0.0  ;;  %v1472_v23 = vsub.f32 %v1716_v18, %v1764_v20  ;;  %v1459_v24 = vpop.f32.mrb[3].mxu1 }
 0x119   : > { %v1478_v25 = vsel %vm1477_vm4, %v1473_v19, 0.0  ;;  %v1471_v26 = vsub.f32 %v868_v21, %v1459_v24 }
 0x11a   : > { %v1480_v27 = vadd.f32 %v1479_v22, %v1478_v25  ;;  %v1476_v28 = vmul.f32 %v1472_v23, %v1472_v23 }
 0x11b   : > { %v1475_v29 = vmul.f32 %v1471_v26, %v1471_v26 }
 0x11c   : > { %v1483_v32 = vsel %vm1477_vm4, %v1476_v28, 0.0 }
 0x11d   : > { %v1481_v30 = vsel %vm1477_vm4, %v1475_v29, 0.0 }
 0x11e   : > { %v1482_v31 = vadd.f32 %v1481_v30, %v1480_v27 }
 0x120   : > { %v1484_v33 = vadd.f32 %v1483_v32, %v1482_v31 }
 0x122   : > { %v1485_v34 = vrot.slane %v1484_v33, 4 }
 0x124   : > { %v1486_v35 = vadd.f32 %v1485_v34, %v1484_v33 }
 0x126   : > { %v1487_v36 = vrot.slane %v1486_v35, 2 }
 0x128   : > { %v1488_v37 = vadd.f32 %v1487_v36, %v1486_v35 }
 0x12a   : > { %v1489_v38 = vrot.slane %v1488_v37, 1 }
 0x12c   : > { %v1490_v39 = vadd.f32 %v1489_v38, %v1488_v37 }
 0x12e   : > { %v1492_v40 = vadd.f32 1e-30, %v1490_v39 }
 0x130   : > { %1831 = vlog2.f32 %v1492_v40 }
 0x13a   : > { %v1832_v41 = vpop.eup %1831 }
 0x13b   : > { %v1494_v42 = vmul.f32 0.6931472, %v1832_v41 }
 0x13d   : > { %v1495_v43 = vmul.f32 0.8950609, %v1494_v42 }
 0x13f   : > { %v1496_v44 = vmul.f32 1.442695, %v1495_v43 }
 0x141   : > { %1833 = vpow2.f32 %v1496_v44 }
 0x14b   : > { %v1834_v45 = vpop.eup %1833 }
 0x14c   : > { %v1498_v46 = vmul.f32 1.5769435, %v1834_v45 }
 0x14e   : > { %v1499_v47 = vadd.f32 1.0, %v1498_v46 }
 0x150   : > { %1835 = vrcp.f32 %v1499_v47 }
 0x15a   : > { %v1836_v51 = vpop.eup %1835 }
 0x15b   : > { %v1505_v52 = vsub.f32 1.0, %v1836_v51  ;;  %v1504_v53 = vmax.f32 %v1836_v51, 0.0001 }
 0x15d   : > { %v1506_v54 = vmax.f32 %v1505_v52, 0.0001 }
 0x15f   : > { %v1507_v55 = vsel %vm1502_vm5, %v1504_v53, %v1506_v54 }
 0x160   : > { %1837 = vlog2.f32 %v1507_v55 }
 0x16a   : > { %v1838_v56 = vpop.eup %1837 }
 0x16b   : > { %v1509_v57 = vmul.f32 0.6931472, %v1838_v56 }
 0x16d   : > { %v1510_v59 = vmul.f32 -1.0, %v1509_v57 }
 0x16f   : > { %v1511_v60 = vsel %vm1503_vm6, %v1510_v59, 0.0 }
 0x170   : > { %v1512_v61 = vadd.f32 %v1511_v60, %v1491_v58 }
 0x172   : > { %1514 = vst.msk [vmem:[#allocation2] sm:$0x1] %vm260_vm3, %v1512_v61 }
 0x179   : > { %v1518_v0 = vld [vmem:[#allocation2] sm:$0x1] }
 0x17a   : > { %v1519_v62 = vsel %vm260_vm3, %v1518_v0, 0.0 }
 0x17b   : > { %1520 = vadd.xlane.f32.xlu0 %v1519_v62 }
 0x208   : > { %v1521_v63 = vpop.xlane.xlu0 %1520 }
 0x209   : > { %v1522_v1 = vmul.f32 0.020833334, %v1521_v63 }
 0x20b   : > { %1524 = vst.msk [vmem:[%s255_s23] sm:$0x1] %vm1523_vm7, %v1522_v1 }
 0x20c PF: > { %s14_s17 = sadd.s32 1, %s1861_s17   ;;  %s2158_s15 = smov %s1857_s16 }
 0x20d   : > { %p11_p6 = scmp.ge.s32.totalorder %s14_s17, 4   ;;  %s2159_s16 = smov %s2161_s18 }
 0x20f   :  { %13 = sbr.rel (!%p11_p6) target bundleno = 2 (0x2), region = 77 }

</bundles_post_ra>
